<compile_context>
chip_gen: v7x
topology: tpu7x:2x2x1
jax: 0.10.0
libtpu: 0.0.40
codegen_flags: <defaults>
</compile_context>

<pallas_src>
import functools
from typing import NamedTuple

import jax
import jax.numpy as jnp
from jax.experimental import pallas as pl
from jax.experimental.pallas import tpu as pltpu


# ----------------------------------------------------------------------------
# Small helpers
# ----------------------------------------------------------------------------
def _cdiv(a, b):
    return -(-a // b)


def _round_up(x, m):
    return _cdiv(x, m) * m


def _plan_dim(size, max_tile, granule):
    """Pick a tile size <= max_tile (multiple of `granule`) that minimizes
    padding: returns (tile, padded_size) with padded_size % tile == 0."""
    size_g = _round_up(size, granule)
    if size_g <= max_tile:
        return size_g, size_g
    n_blocks = _cdiv(size_g, max_tile)
    tile = _round_up(_cdiv(size_g, n_blocks), granule)
    padded = tile * _cdiv(size_g, tile)
    return tile, padded


def _vmem_cap_bytes():
    """Generation-aware VMEM budget (v5e/v6e: 128 MiB, v7x: 64 MiB per TC)."""
    try:
        cap = int(pltpu.get_tpu_info().vmem_capacity_bytes)
    except Exception:
        cap = 64 << 20  # conservative: assume v7x per-TC VMEM
    return max(int(cap * 0.70), 16 << 20)


class _HeadPlan(NamedTuple):
    num_pc: int
    hidden: int
    tn: int
    tk: int
    n_pad: int
    h_pad: int


# ----------------------------------------------------------------------------
# Kernels
# ----------------------------------------------------------------------------
def _dense_bias_acc_kernel(x_ref, w_ref, b_ref, o_ref, acc_ref):
    # x_ref: (tm, tk)  w_ref: (tk, tn)  b_ref: (1, tn) f32  o_ref: (tm, tn)
    # acc_ref: (tm, tn) f32 scratch, persists across the K grid axis.
    k = pl.program_id(2)

    @pl.when(k == 0)
    def _():
        acc_ref[...] = jnp.zeros_like(acc_ref)

    acc_ref[...] += jnp.dot(
        x_ref[...], w_ref[...], preferred_element_type=jnp.float32
    )

    @pl.when(k == pl.num_programs(2) - 1)
    def _():
        o_ref[...] = (acc_ref[...] + b_ref[...]).astype(o_ref.dtype)


def _dense_bias_single_kernel(x_ref, w_ref, b_ref, o_ref):
    # Single-K variant: no accumulator scratch, direct MXU -> epilogue -> store.
    o_ref[...] = (
        jnp.dot(x_ref[...], w_ref[...], preferred_element_type=jnp.float32)
        + b_ref[...]
    ).astype(o_ref.dtype)


# ----------------------------------------------------------------------------
# One-time parameter prep (outside the per-call path)
# ----------------------------------------------------------------------------
def prepare_glm_head_params(weight, bias, *, compute_dtype=jnp.bfloat16,
                            tn=1024, tk=1024):
    """weight: [num_pc, hidden] (torch nn.Linear layout); bias: [num_pc].

    Returns (w_padded [H_pad, N_pad] in compute_dtype, b_padded [1, N_pad] f32,
    plan).  Call once per parameter set; the per-call forward never touches the
    raw weight again (no per-call HBM cast/pad passes on the weight).
    """
    N, H = weight.shape
    tn_eff, n_pad = _plan_dim(N, tn, 128)   # lane-dense output (>=128)
    tk_eff, h_pad = _plan_dim(H, tk, 128)

    w = weight.T.astype(compute_dtype)      # [H, N]
    if (h_pad, n_pad) != (H, N):
        w = jnp.pad(w, ((0, h_pad - H), (0, n_pad - N)))
    b = bias.astype(jnp.float32).reshape(1, N)
    if n_pad != N:
        b = jnp.pad(b, ((0, 0), (0, n_pad - N)))

    plan = _HeadPlan(num_pc=int(N), hidden=int(H), tn=int(tn_eff),
                     tk=int(tk_eff), n_pad=int(n_pad), h_pad=int(h_pad))
    return jax.device_put(w), jax.device_put(b), plan


# ----------------------------------------------------------------------------
# Forward
# ----------------------------------------------------------------------------
@functools.partial(jax.jit, static_argnames=("plan", "tm"))
def glm_head_forward(features, w_padded, b_padded, *, plan, tm=512):
    """features: [B, S, H]; w_padded/b_padded/plan from prepare_glm_head_params.

    Output: [B, S, num_pc] in features.dtype (matmul in compute dtype, f32 acc).
    """
    B, S, H = features.shape
    if H != plan.hidden:
        raise ValueError(f"hidden mismatch: features H={H} vs plan {plan.hidden}")
    M = B * S
    N = plan.num_pc
    out_dtype = features.dtype
    compute_dtype = w_padded.dtype
    c_size = jnp.dtype(compute_dtype).itemsize
    o_size = jnp.dtype(out_dtype).itemsize
    sublane = 16 if c_size == 2 else 8

    # ---- tile planning (static, at trace time) ----
    tm_eff, m_pad = _plan_dim(M, tm, sublane)
    tn_eff, tk_eff = plan.tn, plan.tk
    n_pad, h_pad = plan.n_pad, plan.h_pad

    # v7x megacore guard: expose >= 2 blocks across the parallel axes.
    if (m_pad // tm_eff) * (n_pad // tn_eff) < 2 and m_pad >= 2 * sublane:
        tm_eff = _round_up(_cdiv(m_pad, 2), sublane)
        m_pad = tm_eff * _cdiv(M, tm_eff)

    # Generation-aware VMEM budget; shrink K (then N) tiles if oversized.
    cap = _vmem_cap_bytes()

    def working_set(tm_, tn_, tk_):
        # double-buffered x / w / bias / out tiles + f32 accumulator
        return (2 * (tm_ * tk_ * c_size + tk_ * tn_ * c_size + tn_ * 4
                     + tm_ * tn_ * o_size) + tm_ * tn_ * 4)

    while working_set(tm_eff, tn_eff, tk_eff) > cap and tk_eff % 256 == 0:
        tk_eff //= 2
    while working_set(tm_eff, tn_eff, tk_eff) > cap and tn_eff % 256 == 0:
        tn_eff //= 2
    vmem_limit = int(min(max(2 * working_set(tm_eff, tn_eff, tk_eff),
                             32 << 20), cap))

    gm = m_pad // tm_eff
    gn = n_pad // tn_eff
    gk = h_pad // tk_eff

    # ---- activation prep (only what is strictly needed per call) ----
    x2d = features.reshape(M, H)
    if x2d.dtype != compute_dtype:
        x2d = x2d.astype(compute_dtype)
    if (m_pad, h_pad) != (M, H):
        # K padding is zeros (doesn't change the reduction); M padding is at
        # most one granule of garbage rows which get sliced off below.
        x2d = jnp.pad(x2d, ((0, m_pad - M), (0, h_pad - H)))

    cost = pl.CostEstimate(
        flops=2 * M * H * N,
        transcendentals=0,
        bytes_accessed=(M * H * c_size + H * N * c_size
                        + M * N * o_size + N * 4),
    )

    # TODO(synk): v5e mem-bound regime could benefit from pipeline_mode=
    # pl.Buffered(3) on the weight spec; v7x could use an fp8 weight path.
    if gk == 1:
        out2d = pl.pallas_call(
            _dense_bias_single_kernel,
            out_shape=jax.ShapeDtypeStruct((m_pad, n_pad), out_dtype),
            grid_spec=pltpu.PrefetchScalarGridSpec(
                num_scalar_prefetch=0,
                grid=(gm, gn),
                in_specs=[
                    pl.BlockSpec((tm_eff, tk_eff), lambda i, j: (i, 0)),
                    pl.BlockSpec((tk_eff, tn_eff), lambda i, j: (0, j)),
                    pl.BlockSpec((1, tn_eff), lambda i, j: (0, j)),
                ],
                out_specs=pl.BlockSpec((tm_eff, tn_eff), lambda i, j: (i, j)),
            ),
            compiler_params=pltpu.CompilerParams(
                dimension_semantics=("parallel", "parallel"),
                vmem_limit_bytes=vmem_limit,
            ),
            cost_estimate=cost,
        )(x2d, w_padded, b_padded)
    else:
        out2d = pl.pallas_call(
            _dense_bias_acc_kernel,
            out_shape=jax.ShapeDtypeStruct((m_pad, n_pad), out_dtype),
            grid_spec=pltpu.PrefetchScalarGridSpec(
                num_scalar_prefetch=0,
                grid=(gm, gn, gk),
                in_specs=[
                    pl.BlockSpec((tm_eff, tk_eff), lambda i, j, k: (i, k)),
                    pl.BlockSpec((tk_eff, tn_eff), lambda i, j, k: (k, j)),
                    pl.BlockSpec((1, tn_eff), lambda i, j, k: (0, j)),
                ],
                out_specs=pl.BlockSpec((tm_eff, tn_eff), lambda i, j, k: (i, j)),
                scratch_shapes=[pltpu.VMEM((tm_eff, tn_eff), jnp.float32)],
            ),
            compiler_params=pltpu.CompilerParams(
                dimension_semantics=("parallel", "parallel", "arbitrary"),
                vmem_limit_bytes=vmem_limit,
            ),
            cost_estimate=cost,
        )(x2d, w_padded, b_padded)

    if (m_pad, n_pad) != (M, N):
        out2d = out2d[:M, :N]
    return out2d.reshape(B, S, N)


# ----------------------------------------------------------------------------
# Smoke test
# ----------------------------------------------------------------------------
if __name__ == "__main__":
    # Small config: hidden_size=32, num_pc=16, batch=2, seq=8.
    B, S, H, N = 2, 8, 32, 16

    key = jax.random.PRNGKey(0)
    k_feat, k_w, k_b = jax.random.split(key, 3)

    features = jax.random.normal(k_feat, (B, S, H), dtype=jnp.float32)
    # torch nn.Linear layout: weight [num_pc, hidden], bias [num_pc].
    weight = jax.random.normal(k_w, (N, H), dtype=jnp.float32) * (1.0 / H ** 0.5)
    bias = jax.random.normal(k_b, (N,), dtype=jnp.float32) * 0.01

    ref = features @ weight.T + bias

    # Default path: bf16 MXU compute, f32 accumulation, one-time weight prep.
    w_p, b_p, plan = prepare_glm_head_params(weight, bias)
    out = glm_head_forward(features, w_p, b_p, plan=plan)
    out = jax.block_until_ready(out)
    assert out.shape == (B, S, N)
    assert float(jnp.max(jnp.abs(out - ref))) < 5e-2, "bf16 path mismatch"

    # f32-compute path for an exact-ish check.
    w32, b32, plan32 = prepare_glm_head_params(weight, bias,
                                               compute_dtype=jnp.float32)
    out32 = glm_head_forward(features, w32, b32, plan=plan32)
    out32 = jax.block_until_ready(out32)
    assert jnp.allclose(out32, ref, atol=1e-5, rtol=1e-5), "f32 path mismatch"

    # TODO(synk): self.layer_norm exists in __init__ but is unused in forward(),
    # so it is intentionally not applied here (matches the PyTorch forward).
    print("KERNEL_OK")
</pallas_src>

<mosaic_0001>
module attributes {stable_mosaic.version = 11 : i64} {
  func.func @_dense_bias_single_kernel(%arg0: i32, %arg1: i32, %arg2: memref<16x128xbf16, #tpu.memory_space<vmem>>, %arg3: memref<128x128xbf16, #tpu.memory_space<vmem>>, %arg4: memref<1x128xf32, #tpu.memory_space<vmem>>, %arg5: memref<16x128xf32, #tpu.memory_space<vmem>>) attributes {dimension_semantics = [#tpu.dimension_semantics<parallel>, #tpu.dimension_semantics<parallel>], iteration_bounds = array<i64: 1, 1>, scalar_prefetch = 0 : i64, scratch_operands = 0 : i64, tpu.core_type = #tpu.core_type<tc>, window_params = [{transform_indices = @transform_0, window_bounds = array<i64: 16, 128>}, {transform_indices = @transform_1, window_bounds = array<i64: 128, 128>}, {transform_indices = @transform_2, window_bounds = array<i64: 1, 128>}, {transform_indices = @transform_3, window_bounds = array<i64: 16, 128>}]} {
    %c0 = arith.constant 0 : index
    %c0_0 = arith.constant 0 : index
    %0 = vector.load %arg2[%c0, %c0_0] : memref<16x128xbf16, #tpu.memory_space<vmem>>, vector<16x128xbf16>
    %c0_1 = arith.constant 0 : index
    %c0_2 = arith.constant 0 : index
    %1 = vector.load %arg3[%c0_1, %c0_2] : memref<128x128xbf16, #tpu.memory_space<vmem>>, vector<128x128xbf16>
    %cst = arith.constant dense<0.000000e+00> : vector<16x128xf32>
    %2 = tpu.matmul %0, %1, %cst {dimension_numbers = #tpu.dot_dimension_numbers<[1], [0], [0], [1], [0, 0, 1, 1], [], []>} : vector<16x128xbf16>, vector<128x128xbf16>, vector<16x128xf32> -> vector<16x128xf32>
    %c0_3 = arith.constant 0 : index
    %c0_4 = arith.constant 0 : index
    %3 = vector.load %arg4[%c0_3, %c0_4] : memref<1x128xf32, #tpu.memory_space<vmem>>, vector<1x128xf32>
    %4 = vector.broadcast %3 : vector<1x128xf32> to vector<16x128xf32>
    %5 = arith.addf %2, %4 : vector<16x128xf32>
    %c0_5 = arith.constant 0 : index
    %c0_6 = arith.constant 0 : index
    %6 = vector.load %arg5[%c0_5, %c0_6] : memref<16x128xf32, #tpu.memory_space<vmem>>, vector<16x128xf32>
    tpu.vector_store %arg5[%c0_5, %c0_6], %5 {strides = array<i32>} : memref<16x128xf32, #tpu.memory_space<vmem>>, vector<16x128xf32>,
    return
  }
  func.func @transform_0(%arg0: i32, %arg1: i32) -> (i32, i32) {
    %c0_i32 = arith.constant 0 : i32
    %c0_i32_0 = arith.constant 0 : i32
    return %arg0, %c0_i32 : i32, i32
  }
  func.func @transform_1(%arg0: i32, %arg1: i32) -> (i32, i32) {
    %c0_i32 = arith.constant 0 : i32
    %c0_i32_0 = arith.constant 0 : i32
    return %c0_i32, %arg1 : i32, i32
  }
  func.func @transform_2(%arg0: i32, %arg1: i32) -> (i32, i32) {
    %c0_i32 = arith.constant 0 : i32
    %c0_i32_0 = arith.constant 0 : i32
    return %c0_i32, %arg1 : i32, i32
  }
  func.func @transform_3(%arg0: i32, %arg1: i32) -> (i32, i32) {
    %c0_i32 = arith.constant 0 : i32
    return %arg0, %arg1 : i32, i32
  }
}

</mosaic_0001>

<bundles_post_ra>
// kernel: glm_head_forward.1
= control target key start
LH: loop header
LB: loop body
LE: loop exit
PB: predicated region body
PF: predicated region fallthrough
CT: control target
= control target key end

     0   :  { %8 = vsyncpa [#allocation3], 0  ;;  %s233_s12 = smov [#allocation2]   ;;  %s282_s0 = inlined_call_operand.vmem [shape: bf16[16,128], index: 0, kind: input, shape index: {}]   ;;  %s283_s1 = inlined_call_operand.hbm [shape: bf16[128,128], index: 1, kind: input, shape index: {}]   ;;  %s284_s2 = inlined_call_operand.vmem [shape: f32[1,128], index: 2, kind: input, shape index: {}]   ;;  %s285_s3 = inlined_call_operand.vmem [shape: f32[16,128], index: 3, kind: output, shape index: {}]  }
   0x1   :  { %s16_s13 = sshll.u32 %s233_s12, 4  ;;  %s209_s16 = scalar_lea.hbm %s283_s1, 1024  ;;  %s17_s13 = int_to_ptr.vmem [resolvable:$true] %s16_s13 }
   0x2   :  { %p210_p0 = scmp.ne.s32.totalorder %s283_s1, %s209_s16  ;;  %p213_p1 = scmp.lt.u32.totalorder %s209_s16, %s283_s1 }
   0x4   :  { %p215_p2 = pnand %p213_p1, %p210_p0 }
   0x6   :  { %218 = shalt.err (!%p215_p2)
}
   0x7   :  { %s219_s21 = scalar_lea.vmem %s17_s13, 1024  ;;  %p224_p4 = scmp.lt.s32.totalorder %s17_s13, %s17_s13 }
   0x8   :  { %p220_p3 = scmp.ne.s32.totalorder %s17_s13, %s219_s21  ;;  %p225_p5 = scmp.lt.s32.totalorder %s219_s21, %s219_s21 }
   0xa   :  { %p226_p6 = por %p225_p5, %p224_p4 }
   0xc   :  { %p227_p7 = pnand %p226_p6, %p220_p3 }
   0xe   :  { %230 = shalt.err (!%p227_p7)
}
   0xf   :  { %s234_s22 = smov 64   ;;  %s235_s23 = smov 4  }
  0x10   :  { %22 = dma.hbm_to_vmem [thread:$0]  %s283_s1, 1024, %s17_s13, [#allocation3], %s234_s22, %s234_s22, %s235_s23  }
  0x11   :  { %231 = dma.done.wait [#allocation3], 1024  }
  0x12   :  { %232 = vsyncadd [#allocation3], 4294966272  ;;  %v236_v0 = vmov 0.0   ;;  %vm237_vm0 = vmmov 0   ;;  %v200_v1 = vld [vmem:[#allocation2] sm:$0xff]   ;;  %v201_v2 = vld [vmem:[#allocation2 + $0x8] sm:$0xff]  }
  0x13   :  { %175 = vmatprep.subr.bf16.mxu0 %v236_v0  ;;  %191 = vmatprep.mubr.msk.bf16.mxu0 %vm237_vm0, %v236_v0  ;;  %v202_v3 = vld [vmem:[#allocation2 + $0x10] sm:$0xff]   ;;  %v203_v4 = vld [vmem:[#allocation2 + $0x18] sm:$0xff]   ;;  %v204_v5 = vld [vmem:[#allocation2 + $0x20] sm:$0xff]  }
  0x14   :  { %176 = vmatpush3.bf16.msra.mxu0 %v200_v1  ;;  %v205_v6 = vld [vmem:[#allocation2 + $0x28] sm:$0xff]   ;;  %v206_v7 = vld [vmem:[#allocation2 + $0x30] sm:$0xff]   ;;  %v207_v8 = vld [vmem:[#allocation2 + $0x38] sm:$0xff]  }
  0x15   :  { %177 = vmatprep.subr.bf16.mxu0 %v236_v0  ;;  %v208_v9 = vld [vmem:[%s282_s0] sm:$0xff]  }
  0x16   :  { %v156_v10 = vld [vmem:[%s284_s2] ss:$0 sm:$0xff] }
  0x18   :  { %178 = vmatpush3.bf16.msra.mxu0 %v201_v2 }
  0x19   :  { %179 = vmatprep.subr.bf16.mxu0 %v236_v0 }
  0x1c   :  { %180 = vmatpush3.bf16.msra.mxu0 %v202_v3 }
  0x1d   :  { %181 = vmatprep.subr.bf16.mxu0 %v236_v0 }
  0x20   :  { %182 = vmatpush3.bf16.msra.mxu0 %v203_v4 }
  0x21   :  { %183 = vmatprep.subr.bf16.mxu0 %v236_v0 }
  0x24   :  { %184 = vmatpush3.bf16.msra.mxu0 %v204_v5 }
  0x25   :  { %185 = vmatprep.subr.bf16.mxu0 %v236_v0 }
  0x28   :  { %186 = vmatpush3.bf16.msra.mxu0 %v205_v6 }
  0x29   :  { %187 = vmatprep.subr.bf16.mxu0 %v236_v0 }
  0x2c   :  { %188 = vmatpush3.bf16.msra.mxu0 %v206_v7 }
  0x2d   :  { %189 = vmatprep.subr.bf16.mxu0 %v236_v0 }
  0x30   :  { %190 = vmatpush3.bf16.msra.mxu0 %v207_v8 }
  0x33   :  { %192 = vmatmul.mubr.bf16.vlgmr.msra.gmra.mrb[0].mxu0 %v208_v9 }
 0x106   :  { %v142_v11 = vpop.f32.mrb[0].mxu0 }
 0x107   :  { %v143_v12 = vadd.f32 %v156_v10, %v142_v11  ;;  %v193_v13 = vpop.f32.mrb[1].mxu0 }
 0x108   :  { %v145_v14 = vpop.f32.mrb[2].mxu0 }
 0x109   :  { %149 = vst [vmem:[%s285_s3] sm:$0xff] %v143_v12  ;;  %v146_v15 = vadd.f32 %v156_v10, %v145_v14  ;;  %v194_v16 = vpop.f32.mrb[3].mxu0 }
 0x10b   :  { %150 = vst [vmem:[%s285_s3 + $0x8] sm:$0xff] %v146_v15 }
 0x10c   :  { %155 = vsyncpa [#allocation3], 1 }

</bundles_post_ra>
